<compile_context>
chip_gen: v7x
topology: tpu7x:2x2x1
jax: 0.10.0
libtpu: 0.0.40
codegen_flags: <defaults>
</compile_context>

<pallas_src>
import jax
import jax.numpy as jnp
from jax import lax
from jax.experimental import pallas as pl
from jax.experimental.pallas import tpu as pltpu

N, C, H, W = 2, 4, 16, 16          # small shapes consistent with an NCHW conv model
K = 8                               # conv output channels
NUM_CLASSES = 10
KH = KW = 3
HW = H * W                          # 256 spatial positions per image
NHW = N * HW                        # 512 lane positions (both images on the lane axis)
RP = KH * KW * C + 1                # 37 patch rows: 36 conv taps + ones row (carries bias)
CPAD = 128                          # lane-padded class dim for an unmasked, lane-dense store


def student_kernel(patches_ref, wconv_ref, pslab_ref, out_ref):
    # patches_ref: [RP, NHW]    bf16  im2col tap stack for both images; last row = 1.0
    # wconv_ref:   [K, RP]      bf16  conv weights; last column = conv bias
    # pslab_ref:   [K+1, CPAD]  f32   rows 0..K-1: fc_w * 1/(H*W) (classes zero-padded),
    #                                 row K: fc_b (zero-padded)
    # out_ref:     [N, CPAD]    f32   lane-dense logits (wrapper slices [:, :10])

    # Single MXU matmul: conv (with bias folded in) for both images, lane-dense [K, 512].
    conv = jnp.dot(wconv_ref[...], patches_ref[...],
                   preferred_element_type=jnp.float32)
    conv = jnp.maximum(conv, 0.0)                              # ReLU, f32 VPU

    pslab = pslab_ref[...]
    fcw = pslab[:K, :]                                         # [K, CPAD], GAP scale folded in
    fcb = pslab[K:K + 1, :]                                    # [1, CPAD]

    rows = []
    for n in range(N):                                         # static unroll, N is tiny
        # Global-avg-pool: lane-aligned 256-wide segment sum (scale lives in fcw).
        feat = jnp.sum(conv[:, n * HW:(n + 1) * HW], axis=-1, keepdims=True)   # [K, 1]
        # Tiny FC as VPU broadcast-multiply + sublane reduction (no second MXU trip).
        rows.append(jnp.sum(feat * fcw, axis=0, keepdims=True))                # [1, CPAD]

    out_ref[...] = jnp.concatenate(rows, axis=0) + fcb         # one unmasked [N, CPAD] store


def student_forward(x, w_conv, b_conv, fc_w, fc_b):
    # x: [N, C, H, W] f32; w_conv: [K, C, 3, 3]; b_conv: [K]; fc_w: [K, 10]; fc_b: [10]

    # Wrapper-side im2col: lane-aligned, pad-free tap stack for both images.
    # patches[(dy*KW+dx)*C + c, n*HW + y*W + xcol] = xpad[n, c, y+dy, xcol+dx]
    xpad = jnp.pad(x, ((0, 0), (0, 0), (1, 1), (1, 1)))                       # [N, C, H+2, W+2]
    taps = jnp.stack([xpad[:, :, dy:dy + H, dx:dx + W]
                      for dy in range(KH) for dx in range(KW)], axis=0)       # [9, N, C, H, W]
    patches = taps.transpose(0, 2, 1, 3, 4).reshape(KH * KW * C, NHW)
    patches = jnp.concatenate([patches, jnp.ones((1, NHW), patches.dtype)], axis=0)
    patches = patches.astype(jnp.bfloat16)                                    # [RP, NHW]

    # Conv weights flattened to match the patch-row ordering; bias appended as last column.
    w9 = jnp.transpose(w_conv, (0, 2, 3, 1)).reshape(K, KH * KW * C)          # [K, 36]
    wconv = jnp.concatenate([w9, b_conv.reshape(K, 1)], axis=1).astype(jnp.bfloat16)  # [K, RP]

    # f32 parameter slab: pre-scaled FC weights (GAP 1/(H*W) folded in) + FC bias.
    pslab = jnp.zeros((K + 1, CPAD), jnp.float32)
    pslab = pslab.at[:K, :NUM_CLASSES].set(fc_w * (1.0 / (H * W)))
    pslab = pslab.at[K, :NUM_CLASSES].set(fc_b)

    args = (patches, wconv, pslab)
    in_bytes = sum(int(a.size) * a.dtype.itemsize for a in args)
    out_bytes = N * CPAD * 4
    flops = 2 * K * RP * NHW + N * (K * HW + 2 * K * CPAD)

    vmem = pl.BlockSpec(memory_space=pltpu.MemorySpace.VMEM)
    out = pl.pallas_call(
        student_kernel,
        out_shape=jax.ShapeDtypeStruct((N, CPAD), jnp.float32),
        in_specs=[vmem] * len(args),
        out_specs=vmem,
        cost_estimate=pl.CostEstimate(
            flops=flops, transcendentals=0, bytes_accessed=in_bytes + out_bytes),
    )(*args)
    return out[:, :NUM_CLASSES]


if __name__ == "__main__":
    key = jax.random.PRNGKey(0)
    kx, kw1, kb1, kw2, kb2 = jax.random.split(key, 5)

    x = jax.random.normal(kx, (N, C, H, W), dtype=jnp.float32)
    # Deterministic parameter init (Conv2d [K, C, 3, 3], bias [K]; Linear [K, 10], bias [10]).
    w_conv = jax.random.normal(kw1, (K, C, KH, KW), dtype=jnp.float32) * 0.1
    b_conv = jax.random.normal(kb1, (K,), dtype=jnp.float32) * 0.1
    fc_w = jax.random.normal(kw2, (K, NUM_CLASSES), dtype=jnp.float32) * 0.1
    fc_b = jax.random.normal(kb2, (NUM_CLASSES,), dtype=jnp.float32) * 0.1

    logits = student_forward(x, w_conv, b_conv, fc_w, fc_b)
    jax.block_until_ready(logits)

    # Pure-JAX reference of the same forward pass, using the same bf16-rounded MXU
    # operands the kernel uses (input, conv weight, conv bias folded into the matmul);
    # accumulation and the whole epilogue are f32 in both.
    xb = x.astype(jnp.bfloat16).astype(jnp.float32)
    wb = w_conv.astype(jnp.bfloat16).astype(jnp.float32)
    bb = b_conv.astype(jnp.bfloat16).astype(jnp.float32)
    conv_ref = lax.conv_general_dilated(
        xb, wb, window_strides=(1, 1), padding="SAME",
        dimension_numbers=("NCHW", "OIHW", "NCHW"))
    conv_ref = jnp.maximum(conv_ref + bb[None, :, None, None], 0.0)
    feat_ref = jnp.mean(conv_ref, axis=(2, 3))
    logits_ref = feat_ref @ fc_w + fc_b
    assert jnp.allclose(logits, logits_ref, atol=1e-3, rtol=1e-3), (
        float(jnp.max(jnp.abs(logits - logits_ref))))

    print("KERNEL_OK")
</pallas_src>

<mosaic_0001>
module attributes {stable_mosaic.version = 11 : i64} {
  func.func @student_kernel(%arg0: memref<37x512xbf16, #tpu.memory_space<vmem>>, %arg1: memref<8x37xbf16, #tpu.memory_space<vmem>>, %arg2: memref<9x128xf32, #tpu.memory_space<vmem>>, %arg3: memref<2x128xf32, #tpu.memory_space<vmem>>) attributes {dimension_semantics = [], scalar_prefetch = 0 : i64, scratch_operands = 0 : i64, tpu.core_type = #tpu.core_type<tc>} {
    %c0 = arith.constant 0 : index
    %c0_0 = arith.constant 0 : index
    %0 = vector.load %arg1[%c0, %c0_0] : memref<8x37xbf16, #tpu.memory_space<vmem>>, vector<8x37xbf16>
    %c0_1 = arith.constant 0 : index
    %c0_2 = arith.constant 0 : index
    %1 = vector.load %arg0[%c0_1, %c0_2] : memref<37x512xbf16, #tpu.memory_space<vmem>>, vector<37x512xbf16>
    %cst = arith.constant dense<0.000000e+00> : vector<8x512xf32>
    %2 = tpu.matmul %0, %1, %cst {dimension_numbers = #tpu.dot_dimension_numbers<[1], [0], [0], [1], [0, 0, 1, 1], [], []>} : vector<8x37xbf16>, vector<37x512xbf16>, vector<8x512xf32> -> vector<8x512xf32>
    %cst_3 = arith.constant 0.000000e+00 : f32
    %3 = vector.broadcast %cst_3 : f32 to vector<8x512xf32>
    %4 = arith.maximumf %2, %3 : vector<8x512xf32>
    %c0_4 = arith.constant 0 : index
    %c0_5 = arith.constant 0 : index
    %5 = vector.load %arg2[%c0_4, %c0_5] : memref<9x128xf32, #tpu.memory_space<vmem>>, vector<9x128xf32>
    %6 = vector.extract_strided_slice %5 {offsets = [0, 0], sizes = [8, 128], strides = [1, 1]} : vector<9x128xf32> to vector<8x128xf32>
    %7 = vector.extract_strided_slice %5 {offsets = [8, 0], sizes = [1, 128], strides = [1, 1]} : vector<9x128xf32> to vector<1x128xf32>
    %8 = vector.extract_strided_slice %4 {offsets = [0, 0], sizes = [8, 256], strides = [1, 1]} : vector<8x512xf32> to vector<8x256xf32>
    %cst_6 = arith.constant dense<0.000000e+00> : vector<8xf32>
    %9 = vector.multi_reduction <add>, %8, %cst_6 [1] : vector<8x256xf32> to vector<8xf32>
    %10 = vector.shape_cast %9 : vector<8xf32> to vector<8x1xf32>
    %11 = vector.broadcast %10 : vector<8x1xf32> to vector<8x128xf32>
    %12 = arith.mulf %11, %6 : vector<8x128xf32>
    %cst_7 = arith.constant dense<0.000000e+00> : vector<128xf32>
    %13 = vector.multi_reduction <add>, %12, %cst_7 [0] : vector<8x128xf32> to vector<128xf32>
    %14 = vector.shape_cast %13 : vector<128xf32> to vector<1x128xf32>
    %15 = vector.extract_strided_slice %4 {offsets = [0, 256], sizes = [8, 256], strides = [1, 1]} : vector<8x512xf32> to vector<8x256xf32>
    %cst_8 = arith.constant dense<0.000000e+00> : vector<8xf32>
    %16 = vector.multi_reduction <add>, %15, %cst_8 [1] : vector<8x256xf32> to vector<8xf32>
    %17 = vector.shape_cast %16 : vector<8xf32> to vector<8x1xf32>
    %18 = vector.broadcast %17 : vector<8x1xf32> to vector<8x128xf32>
    %19 = arith.mulf %18, %6 : vector<8x128xf32>
    %cst_9 = arith.constant dense<0.000000e+00> : vector<128xf32>
    %20 = vector.multi_reduction <add>, %19, %cst_9 [0] : vector<8x128xf32> to vector<128xf32>
    %21 = vector.shape_cast %20 : vector<128xf32> to vector<1x128xf32>
    %22 = tpu.concatenate %14, %21 in 0 : vector<1x128xf32>, vector<1x128xf32> -> vector<2x128xf32>
    %23 = vector.broadcast %7 : vector<1x128xf32> to vector<2x128xf32>
    %24 = arith.addf %22, %23 : vector<2x128xf32>
    %c0_10 = arith.constant 0 : index
    %c0_11 = arith.constant 0 : index
    %25 = vector.load %arg3[%c0_10, %c0_11] : memref<2x128xf32, #tpu.memory_space<vmem>>, vector<2x128xf32>
    tpu.vector_store %arg3[%c0_10, %c0_11], %24 {strides = array<i32>} : memref<2x128xf32, #tpu.memory_space<vmem>>, vector<2x128xf32>,
    return
  }
}

</mosaic_0001>

<bundles_post_ra>
// kernel: tpu_custom_call.1
= control target key start
LH: loop header
LB: loop body
LE: loop exit
PB: predicated region body
PF: predicated region fallthrough
CT: control target
= control target key end

     0   :  { %8 = vsyncpa [#allocation3], 0  ;;  %s488_s0 = inlined_call_operand.hbm [shape: bf16[37,512], index: 0, kind: input, shape index: {}]   ;;  %s489_s1 = inlined_call_operand.hbm [shape: bf16[8,37], index: 1, kind: input, shape index: {}]   ;;  %s490_s2 = inlined_call_operand.hbm [shape: f32[9,128], index: 2, kind: input, shape index: {}]   ;;  %s491_s3 = inlined_call_operand.hbm [shape: f32[2,128], index: 3, kind: output, shape index: {}]  }
   0x1   :  { %9 = vsyncpa [#allocation6], 0 }
   0x2   :  { %10 = vsyncpa [#allocation4], 0  ;;  %s403_s12 = smov [#allocation5]   ;;  %s404_s14 = smov [#allocation2]  }
   0x3   :  { %s29_s13 = sshll.u32 %s403_s12, 4  ;;  %s16_s15 = sshll.u32 %s404_s14, 4  ;;  %s30_s13 = int_to_ptr.vmem [resolvable:$true] %s29_s13  ;;  %s433_s15 = int_to_ptr.vmem [resolvable:$true] %s16_s15 }
   0x4   :  { %s309_s18 = scalar_lea.hbm %s489_s1, 64 }
   0x5   :  { %p310_p0 = scmp.ne.s32.totalorder %s489_s1, %s309_s18  ;;  %p313_p1 = scmp.lt.u32.totalorder %s309_s18, %s489_s1 }
   0x7   :  { %p315_p2 = pnand %p313_p1, %p310_p0 }
   0x9   :  { %318 = shalt.err (!%p315_p2)
}
   0xa   :  { %s319_s23 = scalar_lea.vmem %s30_s13, 64  ;;  %p324_p4 = scmp.lt.s32.totalorder %s30_s13, %s30_s13 }
   0xb   :  { %p320_p3 = scmp.ne.s32.totalorder %s30_s13, %s319_s23  ;;  %p325_p5 = scmp.lt.s32.totalorder %s319_s23, %s319_s23 }
   0xd   :  { %p326_p6 = por %p325_p5, %p324_p4 }
   0xf   :  { %p327_p7 = pnand %p326_p6, %p320_p3 }
  0x11   :  { %330 = shalt.err (!%p327_p7)
}
  0x12   :  { %32 = dma.hbm_to_vmem [thread:$0]  %s489_s1, 64, %s30_s13, [#allocation6]  }
  0x13   :  { %s331_s28 = scalar_lea.hbm %s488_s0, 1280 }
  0x14   :  { %p332_p8 = scmp.ne.s32.totalorder %s488_s0, %s331_s28  ;;  %p335_p9 = scmp.lt.u32.totalorder %s331_s28, %s488_s0 }
  0x16   :  { %p337_p10 = pnand %p335_p9, %p332_p8 }
  0x18   :  { %340 = shalt.err (!%p337_p10)
}
  0x19   :  { %s341_s6 = scalar_lea.vmem %s433_s15, 1280  ;;  %p346_p12 = scmp.lt.s32.totalorder %s433_s15, %s433_s15 }
  0x1a   :  { %p342_p11 = scmp.ne.s32.totalorder %s433_s15, %s341_s6  ;;  %p347_p13 = scmp.lt.s32.totalorder %s341_s6, %s341_s6 }
  0x1c   :  { %p348_p0 = por %p347_p13, %p346_p12 }
  0x1e   :  { %p349_p1 = pnand %p348_p0, %p342_p11 }
  0x20   :  { %352 = shalt.err (!%p349_p1)
}
  0x21   :  { %s405_s1 = smov 256   ;;  %s406_s7 = smov 16  }
  0x22   :  { %22 = dma.hbm_to_vmem [thread:$0]  %s488_s0, 1280, %s433_s15, [#allocation3], %s405_s1, %s405_s1, %s406_s7  }
  0x23   :  { %s407_s10 = smov [#allocation7]   ;;  %s353_s14 = scalar_lea.hbm %s490_s2, 256 }
  0x24   :  { %s38_s11 = sshll.u32 %s407_s10, 4  ;;  %p354_p2 = scmp.ne.s32.totalorder %s490_s2, %s353_s14  ;;  %s39_s11 = int_to_ptr.vmem [resolvable:$true] %s38_s11 }
  0x25   :  { %p357_p3 = scmp.lt.u32.totalorder %s353_s14, %s490_s2 }
  0x27   :  { %p359_p4 = pnand %p357_p3, %p354_p2 }
  0x29   :  { %362 = shalt.err (!%p359_p4)
}
  0x2a   :  { %s363_s20 = scalar_lea.vmem %s39_s11, 256  ;;  %p368_p6 = scmp.lt.s32.totalorder %s39_s11, %s39_s11 }
  0x2b   :  { %p364_p5 = scmp.ne.s32.totalorder %s39_s11, %s363_s20  ;;  %p369_p7 = scmp.lt.s32.totalorder %s363_s20, %s363_s20 }
  0x2d   :  { %p370_p8 = por %p369_p7, %p368_p6 }
  0x2f   :  { %p371_p9 = pnand %p370_p8, %p364_p5 }
  0x31   :  { %374 = shalt.err (!%p371_p9)
}
  0x32   :  { %s408_s0 = smov 128   ;;  %s409_s15 = smov 8  }
  0x33   :  { %44 = dma.hbm_to_vmem [thread:$0]  %s490_s2, 256, %s39_s11, [#allocation6], %s408_s0, %s408_s0, %s409_s15  }
  0x34   :  { %397 = dma.done.wait [#allocation3], 1280  }
  0x35   :  { %398 = vsyncadd [#allocation3], 4294966016 }
  0x36   :  { %399 = dma.done.wait [#allocation6], 320  }
  0x37   :  { %400 = vsyncadd [#allocation6], 4294966976  ;;  %v410_v0 = vmov 0   ;;  %vm120_vm0 = vcmask 1041408   ;;  %v293_v1 = vld [vmem:[#allocation2 + $0x4] ss:$16 sps:$4 sm:$0xff]  }
  0x38   :  { %168 = vmatprep.mubr.bf16.mxu0 %v410_v0  ;;  %209 = vmatprep.mubr.bf16.mxu1 %v410_v0  ;;  %v295_v2 = vld [vmem:[#allocation2] ss:$16 sps:$4 sm:$0xff]   ;;  %vm121_vm1 = vcmask 1042432   ;;  %v411_v3 = vmov 65535   ;;  %v296_v5 = vld [vmem:[#allocation2 + $0xc] ss:$16 sps:$4 sm:$0xff]  }
  0x39   :  { %v122_v4 = vsel %vm120_vm0, 4294967295, %v411_v3  ;;  %136 = vmatprep.subr.bf16.mxu0 %v293_v1  ;;  %v298_v6 = vld [vmem:[#allocation2 + $0x8] ss:$16 sps:$4 sm:$0xff]   ;;  %v299_v7 = vld [vmem:[#allocation2 + $0x24] ss:$16 sps:$4 sm:$0xff]   ;;  %177 = vmatprep.subr.bf16.mxu1 %v296_v5  ;;  %vm116_vm2 = vcmask 302080  }
  0x3a   :  { %137 = vmatpush1.bf16.msra.mxu0 %v295_v2  ;;  %v301_v8 = vld [vmem:[#allocation2 + $0x20] ss:$16 sps:$4 sm:$0xff]   ;;  %v302_v9 = vld [vmem:[#allocation2 + $0x2c] ss:$16 sps:$4 sm:$0xff]   ;;  %v123_v10 = vsel %vm121_vm1, %v122_v4, 0  ;;  %178 = vmatpush1.bf16.msra.mxu1 %v298_v6  ;;  %v222_v37 = vld [vmem:[#allocation7] sm:$0xff] }
  0x3b   :  { %138 = vmatprep.subr.bf16.mxu0 %v299_v7  ;;  %v304_v11 = vld [vmem:[#allocation2 + $0x28] ss:$16 sps:$4 sm:$0xff]   ;;  %v64_v12 = vld [vmem:[#allocation2 + $0x40] sm:$0x77]  ;;  %179 = vmatprep.subr.bf16.mxu1 %v302_v9  ;;  %v55_v22 = vld [vmem:[#allocation5] sm:$0xf] }
  0x3c   :  { %v65_v13 = vld [vmem:[#allocation2 + $0x48] sm:$0x77]  ;;  %v277_v14 = vcombine.high %v64_v12, %v64_v12  ;;  %v276_v15 = vcombine.low %v64_v12, %v64_v12  ;;  %vm244_vm3 = vcmask 1040384   ;;  %v282_v54 = vld [vmem:[#allocation7 + $0x8] ss:$0 sm:$0xff]  ;;  %s412_s2 = smov [#allocation8]  }
  0x3d   :  { %v279_v16 = vcombine.high %v65_v13, %v65_v13  ;;  %v278_v17 = vcombine.low %v65_v13, %v65_v13  ;;  %s258_s23 = sshll.u32 %s412_s2, 4  ;;  %s259_s23 = int_to_ptr.vmem [resolvable:$true] %s258_s23 }
  0x3e   :  { %139 = vmatpush1.bf16.msra.mxu0 %v301_v8  ;;  %v128_v18 = vand.u32 %v277_v14, %v123_v10  ;;  %v125_v19 = vand.u32 %v276_v15, %v123_v10  ;;  %180 = vmatpush1.bf16.msra.mxu1 %v304_v11  ;;  %s375_s24 = scalar_lea.vmem %s259_s23, 32  ;;  %p380_p11 = scmp.lt.s32.totalorder %s259_s23, %s259_s23 }
  0x3f   :  { %v134_v20 = vand.u32 %v279_v16, %v123_v10  ;;  %v131_v21 = vand.u32 %v278_v17, %v123_v10  ;;  %p376_p10 = scmp.ne.s32.totalorder %s259_s23, %s375_s24  ;;  %p381_p12 = scmp.lt.s32.totalorder %s375_s24, %s375_s24 }
  0x40   :  { %140 = vmatprep.subr.bf16.mxu0 %v128_v18 }
  0x41   :  { %181 = vmatprep.subr.bf16.mxu1 %v134_v20  ;;  %p382_p13 = por %p381_p12, %p380_p11 }
  0x42   :  { %141 = vmatpush1.bf16.msra.mxu0 %v125_v19  ;;  %182 = vmatpush1.bf16.msra.mxu1 %v131_v21 }
  0x43   :  { %p383_p0 = pnand %p382_p13, %p376_p10 }
  0x45   :  { %280 = vmatmul.mubr.msk.bf16.vlgmr.msra.gmra.mrb[0].mxu0 %vm116_vm2, %v55_v22  ;;  %281 = vmatmul.mubr.msk.bf16.vlgmr.msra.gmra.mrb[0].mxu1 %vm116_vm2, %v55_v22 }
 0x118   :  { %v170_v23 = vpop.f32.mrb[0].mxu0  ;;  %v211_v27 = vpop.f32.mrb[0].mxu1 }
 0x119   :  { %v218_v24 = vmax.f32 %v170_v23, 0.0  ;;  %v172_v25 = vpop.f32.mrb[1].mxu0  ;;  %v220_v29 = vmax.f32 %v211_v27, 0.0  ;;  %v213_v30 = vpop.f32.mrb[1].mxu1 }
 0x11a   :  { %v219_v26 = vmax.f32 %v172_v25, 0.0  ;;  %v174_v28 = vpop.f32.mrb[2].mxu0  ;;  %v221_v32 = vmax.f32 %v213_v30, 0.0  ;;  %v215_v33 = vpop.f32.mrb[2].mxu1 }
 0x11b   :  { %v175_v31 = vpop.f32.mrb[3].mxu0  ;;  %v216_v35 = vpop.f32.mrb[3].mxu1 }
 0x11c   :  { %v224_v34 = vadd.f32 %v219_v26, %v218_v24  ;;  %v234_v36 = vadd.f32 %v221_v32, %v220_v29 }
 0x11e   :  { %225 = vadd.xlane.f32.xlu0 %v224_v34 }
 0x122   :  { %235 = vadd.xlane.f32.xlu0 %v234_v36 }
 0x1ab   :  { %v226_v38 = vpop.xlane.xlu0 %225 }
 0x1ac   :  { %v227_v39 = vmul.f32 %v226_v38, %v222_v37 }
 0x1ae   :  { %v228_v40 = vrot.slane %v227_v39, 4 }
 0x1af   :  { %v236_v41 = vpop.xlane.xlu0 %235 }
 0x1b0   :  { %v229_v42 = vadd.f32 %v228_v40, %v227_v39  ;;  %v237_v43 = vmul.f32 %v236_v41, %v222_v37 }
 0x1b2   :  { %v230_v44 = vrot.slane %v229_v42, 2  ;;  %v238_v45 = vrot.slane %v237_v43, 4 }
 0x1b4   :  { %v231_v46 = vadd.f32 %v230_v44, %v229_v42  ;;  %v239_v47 = vadd.f32 %v238_v45, %v237_v43 }
 0x1b6   :  { %v240_v48 = vrot.slane %v239_v47, 2  ;;  %v232_v49 = vrot.slane %v231_v46, 1 }
 0x1b8   :  { %v241_v50 = vadd.f32 %v240_v48, %v239_v47  ;;  %v233_v52 = vadd.f32 %v232_v49, %v231_v46 }
 0x1ba   :  { %v242_v51 = vrot.slane %v241_v50, 1 }
 0x1bc   :  { %v243_v53 = vadd.f32 %v242_v51, %v241_v50 }
 0x1be   :  { %v245_v55 = vsel %vm244_vm3, %v233_v52, %v243_v53 }
 0x1bf   :  { %v250_v56 = vadd.f32 %v282_v54, %v245_v55 }
 0x1c1   :  { %251 = vst [vmem:[#allocation8] sm:$0x3] %v250_v56 }
 0x1c2   :  { %386 = shalt.err (!%p383_p0)
}
 0x1c3   :  { %s387_s27 = scalar_lea.hbm %s491_s3, 32 }
 0x1c4   :  { %p388_p1 = scmp.ne.s32.totalorder %s491_s3, %s387_s27  ;;  %p391_p2 = scmp.lt.u32.totalorder %s387_s27, %s491_s3 }
 0x1c6   :  { %p393_p3 = pnand %p391_p2, %p388_p1 }
 0x1c8   :  { %396 = shalt.err (!%p393_p3)
}
 0x1c9   :  { %261 = dma.vmem_to_hbm [thread:$0]  %s259_s23, 32, %s491_s3, [#allocation4]  }
 0x1ca   :  { %401 = dma.done.wait [#allocation4], 32  }
 0x1cb   :  { %402 = vsyncadd [#allocation4], 4294967264 }
 0x1cc   :  { %265 = vsyncpa [#allocation3], 1 }
 0x1cd   :  { %266 = vsyncpa [#allocation6], 1 }
 0x1ce   :  { %267 = vsyncpa [#allocation4], 1 }

</bundles_post_ra>
